<compile_context>
chip_gen: v5e
topology: v5e:2x2
jax: 0.10.0
libtpu: 0.0.40
codegen_flags: <defaults>
</compile_context>

<pallas_src>
import functools

import jax
import jax.numpy as jnp
import numpy as np
from jax.experimental import pallas as pl
from jax.experimental.pallas import tpu as pltpu


def _prediction_kernel(x_ref, w_pre_ref, w_conv_ref, w_post_ref, w_fin_ref,
                       vec_ref, o_ref, *, window_size, seq_out):
    """One grid step = `batch_tile` sequences flattened onto the MXU M dimension."""
    TB, S, C_in = x_ref.shape
    H1 = w_pre_ref.shape[1]
    H2p = w_post_ref.shape[0]          # conv output channels, lane-padded to 128
    H3p = w_post_ref.shape[1]          # post-linear channels, lane-padded to 128
    C_out = o_ref.shape[2]
    M = TB * S
    cdt = w_pre_ref.dtype              # MXU operand dtype (bf16 on v6e/v7x, f32 on v5e)

    # Rotated rows wrap across batch elements / the block end; they only feed output
    # timesteps >= seq_out, which are dropped by the store slice below.  Keep this
    # invariant explicit (trace-time check, zero runtime cost).
    assert seq_out == S - (window_size - 1)

    # Stage 1: pre_conv_linear (Linear, bias=False) + ReLU for all TB*S timesteps in
    # one matmul.  x arrives as f32 and is cast to the matmul dtype here (VPU, free).
    x2d = x_ref[...].reshape(M, C_in).astype(cdt)
    h = jnp.dot(x2d, w_pre_ref[...], preferred_element_type=jnp.float32)
    h = jnp.maximum(h, 0.0)                                     # (M, H1) f32

    # Stage 2: Conv1d(H1->H2, kernel=window_size) with BatchNorm1d #1 folded into the
    # tap weights.  Per-tap accumulation on sublane-rotated activations: the rotate
    # runs on the XLU slot (overlaps the MXU) and avoids any lane-axis im2col repack.
    acc = jnp.dot(h.astype(cdt), w_conv_ref[0],
                  preferred_element_type=jnp.float32)           # (M, H2p)
    for k in range(1, window_size):
        h_k = pltpu.roll(h, M - k, axis=0)                      # == roll by -k: row i <- row i+k
        acc = acc + jnp.dot(h_k.astype(cdt), w_conv_ref[k],
                            preferred_element_type=jnp.float32)

    # f32 epilogue (v5e VPU has no bf16 ALU).  Vectors are lane-padded to H2p/H3p, so
    # these are full-lane VPU ops with no masking; padded lanes stay exactly 0.
    acc = acc + vec_ref[0:1, :H2p]                              # conv bias (+ folded BN1 shift)
    acc = jnp.maximum(acc, 0.0)                                 # ReLU inside the conv Sequential
    acc = acc * vec_ref[1:2, :H2p] + vec_ref[2:3, :H2p]         # BatchNorm1d #2 (eval, folded)
    acc = jnp.maximum(acc, 0.0)                                 # extra relu() in forward()

    # Stage 3: post_conv_linear (Linear + ReLU).
    p = jnp.dot(acc.astype(cdt), w_post_ref[...],
                preferred_element_type=jnp.float32) + vec_ref[3:4, :H3p]
    p = jnp.maximum(p, 0.0)                                     # (M, H3p)

    # Stage 4: final_layer.  Output keeps its true channel count C_out so the HBM
    # writeback is exactly the useful bytes (no 128-lane padding inflation).
    y = jnp.dot(p.astype(cdt), w_fin_ref[...],
                preferred_element_type=jnp.float32) + vec_ref[4:5, :C_out]
    y = y.reshape(TB, S, C_out)
    o_ref[...] = y[:, :seq_out, :].astype(o_ref.dtype)


def _default_compute_dtype():
    """bf16 matmul operands on v6e/v7x (2x MXU rate, half the weight DMA); f32 on v5e
    (128-deep MXU at equal bf16/f32 rate for these tiny K/N, and no bf16 VPU)."""
    try:
        kind = jax.devices()[0].device_kind.lower()
    except Exception:
        kind = ""
    if "v5 lite" in kind or "v5lite" in kind or "v5e" in kind:
        return jnp.float32
    return jnp.bfloat16


def _pad1(v, n):
    v = v.astype(jnp.float32)
    return jnp.pad(v, (0, n - v.shape[0]))


def prediction_network_forward(x, params, window_size, *,
                               compute_dtype=None, batch_tile=None):
    """x: (B, S, num_predictors) -> (B, S-window_size+1, num_predictees) f32
    (matching torch.squeeze(y, dim=1): the seq axis is dropped iff it has size 1)."""
    B, S, C_in = x.shape
    S_out = S - (window_size - 1)
    assert S_out >= 1, "sequence shorter than the convolution window"
    eps = 1e-5  # PyTorch BatchNorm1d default
    if compute_dtype is None:
        compute_dtype = _default_compute_dtype()

    # ---- parameter folding / padding (plain JAX glue over tiny arrays, runs once) ----
    w_pre_t = params["w_pre"].T                                    # (C_in, H1)
    H1 = w_pre_t.shape[1]
    s1 = params["bn1_gamma"] / jnp.sqrt(params["bn1_var"] + eps)
    t1 = params["bn1_beta"] - params["bn1_mean"] * s1
    wk = jnp.transpose(params["w_conv"], (2, 1, 0))                # (W, H1, H2)
    H2 = wk.shape[2]
    w_post_t = params["w_post"].T                                  # (H2, H3)
    w_fin_t = params["w_fin"].T                                    # (H3, C_out)
    H3, C_out = w_fin_t.shape

    # Lane-pad hidden channel dims to multiples of 128 (exact: padded channels carry
    # zeros through every ReLU/BN).  H1 is NOT padded (would blow up MXU K passes).
    H2p = ((H2 + 127) // 128) * 128
    H3p = ((H3 + 127) // 128) * 128
    L = max(H2p, H3p, ((C_out + 127) // 128) * 128)

    # Fold BatchNorm1d #1 (eval) exactly into the conv taps / conv bias (f32 fold).
    # NOTE: if bn1_var were tiny, folding s1 into bf16 weights would amplify bf16
    # rounding; in that case apply s1/t1 in the f32 stage-1 epilogue instead.
    w_conv_taps = jnp.pad(wk * s1[None, :, None],
                          ((0, 0), (0, 0), (0, H2p - H2)))         # (W, H1, H2p)
    b_conv_f = params["b_conv"] + jnp.einsum("kco,c->o", wk, t1)   # (H2,)
    s2 = params["bn2_gamma"] / jnp.sqrt(params["bn2_var"] + eps)
    t2 = params["bn2_beta"] - params["bn2_mean"] * s2
    w_post_p = jnp.pad(w_post_t, ((0, H2p - H2), (0, H3p - H3)))   # (H2p, H3p)
    w_fin_p = jnp.pad(w_fin_t, ((0, H3p - H3), (0, 0)))            # (H3p, C_out)

    # Pack the tiny per-channel vectors into one (5, L) f32 slab (one BlockSpec/DMA).
    vecs = jnp.stack([_pad1(b_conv_f, L), _pad1(s2, L), _pad1(t2, L),
                      _pad1(params["b_post"], L), _pad1(params["b_fin"], L)])

    # Matmul operands in compute_dtype; x stays f32 and is cast inside the kernel.
    w_pre_c = w_pre_t.astype(compute_dtype)
    w_conv_c = w_conv_taps.astype(compute_dtype)
    w_post_c = w_post_p.astype(compute_dtype)
    w_fin_c = w_fin_p.astype(compute_dtype)

    # ---- batch tiling ----
    # One grid step whenever the batch is small; only split when every step still
    # gets ~512-1024 MXU rows, always on a divisor of B (so no padded batch rows are
    # ever computed or stored), capped by a conservative per-step VMEM working-set
    # budget that is safe for v7x's 64 MiB VMEM.
    if batch_tile is None:
        per_row_bytes = 4 * (2 * C_in + 2 * C_out + H1 + 2 * H2p + H3p + 32)
        max_bt = max(1, (16 << 20) // (per_row_bytes * S))
        want_bt = min(B, max_bt, max(1, -(-1024 // S)))
        divisors = [d for d in range(1, B + 1) if B % d == 0]
        candidates = [d for d in divisors if want_bt <= d <= max_bt]
        batch_tile = candidates[0] if candidates else max(
            d for d in divisors if d <= max_bt)
    else:
        batch_tile = max(1, min(int(batch_tile), B))
        while B % batch_tile:                                      # keep B % batch_tile == 0
            batch_tile -= 1
    num_tiles = B // batch_tile

    kernel = functools.partial(_prediction_kernel,
                               window_size=window_size, seq_out=S_out)

    def const_spec(shape):
        # Small parameter array resident in VMEM; same block every grid step (Pallas
        # only re-DMAs when the block index changes).
        # TODO(synk): pipeline_mode=pl.Buffered(1) would drop the second buffer of
        # these constant blocks; negligible at these weight sizes.
        return pl.BlockSpec(shape, lambda i: (0,) * len(shape))

    out = pl.pallas_call(
        kernel,
        out_shape=jax.ShapeDtypeStruct((B, S_out, C_out), jnp.float32),
        grid=(num_tiles,),
        in_specs=[
            pl.BlockSpec((batch_tile, S, C_in), lambda i: (i, 0, 0)),  # x tile (f32)
            const_spec((C_in, H1)),                                    # w_pre
            const_spec((window_size, H1, H2p)),                        # conv taps (BN1 folded)
            const_spec((H2p, H3p)),                                    # w_post
            const_spec((H3p, C_out)),                                  # w_fin
            const_spec((5, L)),                                        # packed bias/BN vectors
        ],
        out_specs=pl.BlockSpec((batch_tile, S_out, C_out), lambda i: (i, 0, 0)),
        compiler_params=pltpu.CompilerParams(
            # "parallel" is portable across v5e/v6e/v7x; for guaranteed 2-TC sharding
            # on v7x with num_tiles > 1, pltpu.CORE_PARALLEL could be used instead.
            dimension_semantics=("parallel",),
            vmem_limit_bytes=32 * 1024 * 1024,
        ),
    )(x, w_pre_c, w_conv_c, w_post_c, w_fin_c, vecs)

    # torch.squeeze(y, dim=1): only drops the seq axis if it has length 1
    if out.shape[1] == 1:
        out = out[:, 0, :]
    return out


def _reference_forward(x, params, window_size):
    """Plain-JAX reference mirroring the PyTorch forward (eval-mode BatchNorm)."""
    eps = 1e-5
    h = jnp.maximum(jnp.einsum("bsc,hc->bsh", x, params["w_pre"]), 0.0)
    s1 = params["bn1_gamma"] / jnp.sqrt(params["bn1_var"] + eps)
    h = (h - params["bn1_mean"]) * s1 + params["bn1_beta"]
    # Conv1d, channels-last
    S_out = x.shape[1] - (window_size - 1)
    acc = jnp.zeros((x.shape[0], S_out, params["w_conv"].shape[0]), jnp.float32)
    for k in range(window_size):
        acc = acc + jnp.einsum("bsh,oh->bso", h[:, k:k + S_out, :],
                               params["w_conv"][:, :, k])
    acc = acc + params["b_conv"]
    acc = jnp.maximum(acc, 0.0)
    s2 = params["bn2_gamma"] / jnp.sqrt(params["bn2_var"] + eps)
    acc = (acc - params["bn2_mean"]) * s2 + params["bn2_beta"]
    acc = jnp.maximum(acc, 0.0)
    p = jnp.maximum(jnp.einsum("bso,po->bsp", acc, params["w_post"]) + params["b_post"], 0.0)
    y = jnp.einsum("bsp,qp->bsq", p, params["w_fin"]) + params["b_fin"]
    return y


if __name__ == "__main__":
    # Module hyperparameters (small, consistent with __init__):
    num_predictors = 8       # C_in
    num_predictees = 4       # C_out
    window_size = 5
    pre_conv_hidden = 32     # pre_conv_hidden=[32]      -> H1
    conv_hidden = 32         # post_conv_hidden=[32, 16] -> conv out H2
    post_hidden = 16         # H3
    B, S = 2, 16             # output seq length = 12

    key = jax.random.PRNGKey(0)
    ks = jax.random.split(key, 16)

    params = {
        # pre_conv_linear: Linear(num_predictors -> H1, bias=False); torch layout (out, in)
        "w_pre": 0.2 * jax.random.normal(ks[0], (pre_conv_hidden, num_predictors), jnp.float32),
        # BatchNorm1d(H1) eval-mode parameters / running stats
        "bn1_gamma": 1.0 + 0.1 * jax.random.normal(ks[1], (pre_conv_hidden,), jnp.float32),
        "bn1_beta": 0.1 * jax.random.normal(ks[2], (pre_conv_hidden,), jnp.float32),
        "bn1_mean": 0.1 * jax.random.normal(ks[3], (pre_conv_hidden,), jnp.float32),
        "bn1_var": 0.5 + jax.random.uniform(ks[4], (pre_conv_hidden,), jnp.float32),
        # Conv1d(H1 -> H2, kernel=window_size); torch layout (out, in, kernel)
        "w_conv": 0.2 * jax.random.normal(ks[5], (conv_hidden, pre_conv_hidden, window_size), jnp.float32),
        "b_conv": 0.1 * jax.random.normal(ks[6], (conv_hidden,), jnp.float32),
        # BatchNorm1d(H2)
        "bn2_gamma": 1.0 + 0.1 * jax.random.normal(ks[7], (conv_hidden,), jnp.float32),
        "bn2_beta": 0.1 * jax.random.normal(ks[8], (conv_hidden,), jnp.float32),
        "bn2_mean": 0.1 * jax.random.normal(ks[9], (conv_hidden,), jnp.float32),
        "bn2_var": 0.5 + jax.random.uniform(ks[10], (conv_hidden,), jnp.float32),
        # post_conv_linear: Linear(H2 -> H3) + ReLU
        "w_post": 0.2 * jax.random.normal(ks[11], (post_hidden, conv_hidden), jnp.float32),
        "b_post": 0.1 * jax.random.normal(ks[12], (post_hidden,), jnp.float32),
        # final_layer: Linear(H3 -> num_predictees)
        "w_fin": 0.2 * jax.random.normal(ks[13], (num_predictees, post_hidden), jnp.float32),
        "b_fin": 0.1 * jax.random.normal(ks[14], (num_predictees,), jnp.float32),
    }

    x = jax.random.normal(ks[15], (B, S, num_predictors), jnp.float32)
    ref = _reference_forward(x, params, window_size)
    expected_shape = (B, S - (window_size - 1), num_predictees)

    # f32 matmul-operand path: validates the structural changes (single grid step,
    # roll-and-accumulate conv, in-kernel cast, lane-padded H2/H3, unpadded output).
    out_f32 = jax.block_until_ready(
        prediction_network_forward(x, params, window_size, compute_dtype=jnp.float32))
    assert out_f32.shape == expected_shape, out_f32.shape
    np.testing.assert_allclose(np.asarray(out_f32), np.asarray(ref), rtol=2e-2, atol=2e-2)

    # Generation-default matmul-operand path (bf16 on v6e/v7x, f32 on v5e); bf16
    # operand rounding budget ~1%.  Accumulation and the epilogue stay f32.
    out_dev = jax.block_until_ready(
        prediction_network_forward(x, params, window_size))
    assert out_dev.shape == expected_shape, out_dev.shape
    np.testing.assert_allclose(np.asarray(out_dev), np.asarray(ref), rtol=1e-1, atol=1e-1)

    # TODO(synk): BatchNorm1d is implemented in eval/inference mode (running stats);
    # training-mode batch statistics would require a cross-batch reduction pass.
    print("KERNEL_OK")
</pallas_src>

<mosaic_0001>
module attributes {stable_mosaic.version = 11 : i64} {
  func.func @_prediction_kernel(%arg0: i32, %arg1: memref<2x16x8xf32, #tpu.memory_space<vmem>>, %arg2: memref<8x32xf32, #tpu.memory_space<vmem>>, %arg3: memref<5x32x128xf32, #tpu.memory_space<vmem>>, %arg4: memref<128x128xf32, #tpu.memory_space<vmem>>, %arg5: memref<128x4xf32, #tpu.memory_space<vmem>>, %arg6: memref<5x128xf32, #tpu.memory_space<vmem>>, %arg7: memref<2x12x4xf32, #tpu.memory_space<vmem>>) attributes {dimension_semantics = [#tpu.dimension_semantics<parallel>], iteration_bounds = array<i64: 1>, scalar_prefetch = 0 : i64, scratch_operands = 0 : i64, tpu.core_type = #tpu.core_type<tc>, window_params = [{transform_indices = @transform_0, window_bounds = array<i64: 2, 16, 8>}, {pipeline_mode = #tpu.pipeline_mode<synchronous>, transform_indices = @transform_1, window_bounds = array<i64: 8, 32>}, {pipeline_mode = #tpu.pipeline_mode<synchronous>, transform_indices = @transform_2, window_bounds = array<i64: 5, 32, 128>}, {pipeline_mode = #tpu.pipeline_mode<synchronous>, transform_indices = @transform_3, window_bounds = array<i64: 128, 128>}, {pipeline_mode = #tpu.pipeline_mode<synchronous>, transform_indices = @transform_4, window_bounds = array<i64: 128, 4>}, {pipeline_mode = #tpu.pipeline_mode<synchronous>, transform_indices = @transform_5, window_bounds = array<i64: 5, 128>}, {transform_indices = @transform_6, window_bounds = array<i64: 2, 12, 4>}]} {
    %c0 = arith.constant 0 : index
    %c0_0 = arith.constant 0 : index
    %c0_1 = arith.constant 0 : index
    %0 = vector.load %arg1[%c0, %c0_0, %c0_1] : memref<2x16x8xf32, #tpu.memory_space<vmem>>, vector<2x16x8xf32>
    %1 = vector.shape_cast %0 : vector<2x16x8xf32> to vector<32x8xf32>
    %c0_2 = arith.constant 0 : index
    %c0_3 = arith.constant 0 : index
    %2 = vector.load %arg2[%c0_2, %c0_3] : memref<8x32xf32, #tpu.memory_space<vmem>>, vector<8x32xf32>
    %cst = arith.constant dense<0.000000e+00> : vector<32x32xf32>
    %3 = tpu.matmul %1, %2, %cst {dimension_numbers = #tpu.dot_dimension_numbers<[1], [0], [0], [1], [0, 0, 1, 1], [], []>} : vector<32x8xf32>, vector<8x32xf32>, vector<32x32xf32> -> vector<32x32xf32>
    %cst_4 = arith.constant 0.000000e+00 : f32
    %4 = vector.broadcast %cst_4 : f32 to vector<32x32xf32>
    %5 = arith.maximumf %3, %4 : vector<32x32xf32>
    %c0_5 = arith.constant 0 : index
    %c0_6 = arith.constant 0 : index
    %c0_7 = arith.constant 0 : index
    %6 = vector.load %arg3[%c0_5, %c0_6, %c0_7] : memref<5x32x128xf32, #tpu.memory_space<vmem>>, vector<1x32x128xf32>
    %7 = vector.shape_cast %6 : vector<1x32x128xf32> to vector<32x128xf32>
    %cst_8 = arith.constant dense<0.000000e+00> : vector<32x128xf32>
    %8 = tpu.matmul %5, %7, %cst_8 {dimension_numbers = #tpu.dot_dimension_numbers<[1], [0], [0], [1], [0, 0, 1, 1], [], []>} : vector<32x32xf32>, vector<32x128xf32>, vector<32x128xf32> -> vector<32x128xf32>
    %c31_i32 = arith.constant 31 : i32
    %9 = tpu.dynamic_rotate %5 by %c31_i32 dim 0 : vector<32x32xf32>, i32 -> vector<32x32xf32>
    %c1 = arith.constant 1 : index
    %c0_9 = arith.constant 0 : index
    %c0_10 = arith.constant 0 : index
    %10 = vector.load %arg3[%c1, %c0_9, %c0_10] : memref<5x32x128xf32, #tpu.memory_space<vmem>>, vector<1x32x128xf32>
    %11 = vector.shape_cast %10 : vector<1x32x128xf32> to vector<32x128xf32>
    %cst_11 = arith.constant dense<0.000000e+00> : vector<32x128xf32>
    %12 = tpu.matmul %9, %11, %cst_11 {dimension_numbers = #tpu.dot_dimension_numbers<[1], [0], [0], [1], [0, 0, 1, 1], [], []>} : vector<32x32xf32>, vector<32x128xf32>, vector<32x128xf32> -> vector<32x128xf32>
    %13 = arith.addf %8, %12 : vector<32x128xf32>
    %c30_i32 = arith.constant 30 : i32
    %14 = tpu.dynamic_rotate %5 by %c30_i32 dim 0 : vector<32x32xf32>, i32 -> vector<32x32xf32>
    %c2 = arith.constant 2 : index
    %c0_12 = arith.constant 0 : index
    %c0_13 = arith.constant 0 : index
    %15 = vector.load %arg3[%c2, %c0_12, %c0_13] : memref<5x32x128xf32, #tpu.memory_space<vmem>>, vector<1x32x128xf32>
    %16 = vector.shape_cast %15 : vector<1x32x128xf32> to vector<32x128xf32>
    %cst_14 = arith.constant dense<0.000000e+00> : vector<32x128xf32>
    %17 = tpu.matmul %14, %16, %cst_14 {dimension_numbers = #tpu.dot_dimension_numbers<[1], [0], [0], [1], [0, 0, 1, 1], [], []>} : vector<32x32xf32>, vector<32x128xf32>, vector<32x128xf32> -> vector<32x128xf32>
    %18 = arith.addf %13, %17 : vector<32x128xf32>
    %c29_i32 = arith.constant 29 : i32
    %19 = tpu.dynamic_rotate %5 by %c29_i32 dim 0 : vector<32x32xf32>, i32 -> vector<32x32xf32>
    %c3 = arith.constant 3 : index
    %c0_15 = arith.constant 0 : index
    %c0_16 = arith.constant 0 : index
    %20 = vector.load %arg3[%c3, %c0_15, %c0_16] : memref<5x32x128xf32, #tpu.memory_space<vmem>>, vector<1x32x128xf32>
    %21 = vector.shape_cast %20 : vector<1x32x128xf32> to vector<32x128xf32>
    %cst_17 = arith.constant dense<0.000000e+00> : vector<32x128xf32>
    %22 = tpu.matmul %19, %21, %cst_17 {dimension_numbers = #tpu.dot_dimension_numbers<[1], [0], [0], [1], [0, 0, 1, 1], [], []>} : vector<32x32xf32>, vector<32x128xf32>, vector<32x128xf32> -> vector<32x128xf32>
    %23 = arith.addf %18, %22 : vector<32x128xf32>
    %c28_i32 = arith.constant 28 : i32
    %24 = tpu.dynamic_rotate %5 by %c28_i32 dim 0 : vector<32x32xf32>, i32 -> vector<32x32xf32>
    %c4 = arith.constant 4 : index
    %c0_18 = arith.constant 0 : index
    %c0_19 = arith.constant 0 : index
    %25 = vector.load %arg3[%c4, %c0_18, %c0_19] : memref<5x32x128xf32, #tpu.memory_space<vmem>>, vector<1x32x128xf32>
    %26 = vector.shape_cast %25 : vector<1x32x128xf32> to vector<32x128xf32>
    %cst_20 = arith.constant dense<0.000000e+00> : vector<32x128xf32>
    %27 = tpu.matmul %24, %26, %cst_20 {dimension_numbers = #tpu.dot_dimension_numbers<[1], [0], [0], [1], [0, 0, 1, 1], [], []>} : vector<32x32xf32>, vector<32x128xf32>, vector<32x128xf32> -> vector<32x128xf32>
    %28 = arith.addf %23, %27 : vector<32x128xf32>
    %c0_21 = arith.constant 0 : index
    %c0_22 = arith.constant 0 : index
    %29 = vector.load %arg6[%c0_21, %c0_22] : memref<5x128xf32, #tpu.memory_space<vmem>>, vector<1x128xf32>
    %30 = vector.broadcast %29 : vector<1x128xf32> to vector<32x128xf32>
    %31 = arith.addf %28, %30 : vector<32x128xf32>
    %cst_23 = arith.constant 0.000000e+00 : f32
    %32 = vector.broadcast %cst_23 : f32 to vector<32x128xf32>
    %33 = arith.maximumf %31, %32 : vector<32x128xf32>
    %c1_24 = arith.constant 1 : index
    %c0_25 = arith.constant 0 : index
    %34 = vector.load %arg6[%c1_24, %c0_25] : memref<5x128xf32, #tpu.memory_space<vmem>>, vector<1x128xf32>
    %35 = vector.broadcast %34 : vector<1x128xf32> to vector<32x128xf32>
    %36 = arith.mulf %33, %35 : vector<32x128xf32>
    %c2_26 = arith.constant 2 : index
    %c0_27 = arith.constant 0 : index
    %37 = vector.load %arg6[%c2_26, %c0_27] : memref<5x128xf32, #tpu.memory_space<vmem>>, vector<1x128xf32>
    %38 = vector.broadcast %37 : vector<1x128xf32> to vector<32x128xf32>
    %39 = arith.addf %36, %38 : vector<32x128xf32>
    %cst_28 = arith.constant 0.000000e+00 : f32
    %40 = vector.broadcast %cst_28 : f32 to vector<32x128xf32>
    %41 = arith.maximumf %39, %40 : vector<32x128xf32>
    %c0_29 = arith.constant 0 : index
    %c0_30 = arith.constant 0 : index
    %42 = vector.load %arg4[%c0_29, %c0_30] : memref<128x128xf32, #tpu.memory_space<vmem>>, vector<128x128xf32>
    %cst_31 = arith.constant dense<0.000000e+00> : vector<32x128xf32>
    %43 = tpu.matmul %41, %42, %cst_31 {dimension_numbers = #tpu.dot_dimension_numbers<[1], [0], [0], [1], [0, 0, 1, 1], [], []>} : vector<32x128xf32>, vector<128x128xf32>, vector<32x128xf32> -> vector<32x128xf32>
    %c3_32 = arith.constant 3 : index
    %c0_33 = arith.constant 0 : index
    %44 = vector.load %arg6[%c3_32, %c0_33] : memref<5x128xf32, #tpu.memory_space<vmem>>, vector<1x128xf32>
    %45 = vector.broadcast %44 : vector<1x128xf32> to vector<32x128xf32>
    %46 = arith.addf %43, %45 : vector<32x128xf32>
    %cst_34 = arith.constant 0.000000e+00 : f32
    %47 = vector.broadcast %cst_34 : f32 to vector<32x128xf32>
    %48 = arith.maximumf %46, %47 : vector<32x128xf32>
    %c0_35 = arith.constant 0 : index
    %c0_36 = arith.constant 0 : index
    %49 = vector.load %arg5[%c0_35, %c0_36] : memref<128x4xf32, #tpu.memory_space<vmem>>, vector<128x4xf32>
    %cst_37 = arith.constant dense<0.000000e+00> : vector<32x4xf32>
    %50 = tpu.matmul %48, %49, %cst_37 {dimension_numbers = #tpu.dot_dimension_numbers<[1], [0], [0], [1], [0, 0, 1, 1], [], []>} : vector<32x128xf32>, vector<128x4xf32>, vector<32x4xf32> -> vector<32x4xf32>
    %c4_38 = arith.constant 4 : index
    %c0_39 = arith.constant 0 : index
    %51 = vector.load %arg6[%c4_38, %c0_39] : memref<5x128xf32, #tpu.memory_space<vmem>>, vector<1x4xf32>
    %52 = vector.broadcast %51 : vector<1x4xf32> to vector<32x4xf32>
    %53 = arith.addf %50, %52 : vector<32x4xf32>
    %54 = vector.shape_cast %53 : vector<32x4xf32> to vector<2x16x4xf32>
    %55 = vector.extract_strided_slice %54 {offsets = [0, 0, 0], sizes = [2, 12, 4], strides = [1, 1, 1]} : vector<2x16x4xf32> to vector<2x12x4xf32>
    %c0_40 = arith.constant 0 : index
    %c0_41 = arith.constant 0 : index
    %c0_42 = arith.constant 0 : index
    %56 = vector.load %arg7[%c0_40, %c0_41, %c0_42] : memref<2x12x4xf32, #tpu.memory_space<vmem>>, vector<2x12x4xf32>
    tpu.vector_store %arg7[%c0_40, %c0_41, %c0_42], %55 {strides = array<i32>} : memref<2x12x4xf32, #tpu.memory_space<vmem>>, vector<2x12x4xf32>,
    return
  }
  func.func @transform_0(%arg0: i32) -> (i32, i32, i32) {
    %c0_i32 = arith.constant 0 : i32
    %c0_i32_0 = arith.constant 0 : i32
    %c0_i32_1 = arith.constant 0 : i32
    return %arg0, %c0_i32, %c0_i32_0 : i32, i32, i32
  }
  func.func @transform_1(%arg0: i32) -> (i32, i32) {
    %c0_i32 = arith.constant 0 : i32
    %c0_i32_0 = arith.constant 0 : i32
    %c0_i32_1 = arith.constant 0 : i32
    return %c0_i32, %c0_i32_0 : i32, i32
  }
  func.func @transform_2(%arg0: i32) -> (i32, i32, i32) {
    %c0_i32 = arith.constant 0 : i32
    %c0_i32_0 = arith.constant 0 : i32
    %c0_i32_1 = arith.constant 0 : i32
    %c0_i32_2 = arith.constant 0 : i32
    return %c0_i32, %c0_i32_0, %c0_i32_1 : i32, i32, i32
  }
  func.func @transform_3(%arg0: i32) -> (i32, i32) {
    %c0_i32 = arith.constant 0 : i32
    %c0_i32_0 = arith.constant 0 : i32
    %c0_i32_1 = arith.constant 0 : i32
    return %c0_i32, %c0_i32_0 : i32, i32
  }
  func.func @transform_4(%arg0: i32) -> (i32, i32) {
    %c0_i32 = arith.constant 0 : i32
    %c0_i32_0 = arith.constant 0 : i32
    %c0_i32_1 = arith.constant 0 : i32
    return %c0_i32, %c0_i32_0 : i32, i32
  }
  func.func @transform_5(%arg0: i32) -> (i32, i32) {
    %c0_i32 = arith.constant 0 : i32
    %c0_i32_0 = arith.constant 0 : i32
    %c0_i32_1 = arith.constant 0 : i32
    return %c0_i32, %c0_i32_0 : i32, i32
  }
  func.func @transform_6(%arg0: i32) -> (i32, i32, i32) {
    %c0_i32 = arith.constant 0 : i32
    %c0_i32_0 = arith.constant 0 : i32
    %c0_i32_1 = arith.constant 0 : i32
    return %arg0, %c0_i32, %c0_i32_0 : i32, i32, i32
  }
}

</mosaic_0001>

<bundles_post_ra>
// kernel: tpu_custom_call.1
= control target key start
LH: loop header
LB: loop body
LE: loop exit
PB: predicated region body
PF: predicated region fallthrough
CT: control target
= control target key end

     0   :  { %11 = vsyncpa [#allocation3], 0  ;;  %s579_s24 = smov [#allocation2]   ;;  %s580_s26 = smov 128   ;;  %s845_s0 = inlined_call_operand.vmem [shape: f32[2,16,8], index: 0, kind: input, shape index: {}]   ;;  %s846_s1 = inlined_call_operand.vmem [shape: f32[8,32], index: 1, kind: input, shape index: {}]   ;;  %s847_s2 = inlined_call_operand.vmem [shape: f32[5,32,128], index: 2, kind: input, shape index: {}]   ;;  %s848_s3 = inlined_call_operand.hbm [shape: f32[128,128], index: 3, kind: input, shape index: {}]   ;;  %s849_s4 = inlined_call_operand.vmem [shape: f32[128,4], index: 4, kind: input, shape index: {}]   ;;  %s850_s5 = inlined_call_operand.vmem [shape: f32[5,128], index: 5, kind: input, shape index: {}]   ;;  %s851_s6 = inlined_call_operand.vmem [shape: f32[2,12,4], index: 6, kind: output, shape index: {}]  }
   0x1   :  { %s22_s23 = sshll.u32 %s848_s3, 4  ;;  %s24_s25 = sshll.u32 %s579_s24, 4  ;;  %s23_s23 = int_to_ptr.hbm [resolvable:$true] %s22_s23  ;;  %s25_s25 = int_to_ptr.vmem [resolvable:$true] %s24_s25 }
   0x2   :  { %s581_s27 = smov 8  }
   0x3   :  { %30 = dma.hbm_to_vmem [thread:$0]  %s23_s23, 2048, %s25_s25, [#allocation3], %s580_s26, %s580_s26, %s581_s27  }
   0x4   :  { %577 = dma.done.wait [#allocation3], 2048  }
   0x5   :  { %578 = vsyncadd [#allocation3], 4294965248  ;;  %vm44_vm0 = vcmask 64512   ;;  %v43_v0 = vld [vmem:[%s846_s1] sm:$0xff]  ;;  %v93_v2 = vld [vmem:[%s847_s2 + $0x18] sm:$0xff]  ;;  %vm110_vm1 = vcmask 261120   ;;  %v98_v26 = vlaneseq }
   0x6   :  { %v39_v1 = vld [vmem:[%s845_s0] sm:$0xff]  ;;  %72 = vmatpush.msra.mxu0 %v43_v0  ;;  %176 = vmatpush.msra.mxu2 %v93_v2  ;;  %v92_v3 = vld [vmem:[%s847_s2 + $0x10] sm:$0xff]  ;;  %v40_v4 = vld [vmem:[%s845_s0 + $0x8] sm:$0xff]  ;;  %vm494_vm6 = vcmask 31744   ;;  %vm496_vm7 = vcmask 27648  }
   0x7   :  { %505 = vmatmul.msk.f32.vlgmr.msra.gmra.mxu0 %vm44_vm0, %v39_v1  ;;  %v41_v5 = vld [vmem:[%s845_s0 + $0x10] sm:$0xff]  ;;  %v42_v6 = vld [vmem:[%s845_s0 + $0x18] sm:$0xff]  ;;  %v91_v7 = vld [vmem:[%s847_s2 + $0x8] sm:$0xff]  ;;  %v696_v27 = vshrl.u32 %v98_v26, 7 }
   0x8   :  { %177 = vmatpush.msra.mxu2 %v92_v3  ;;  %v90_v8 = vld [vmem:[%s847_s2] sm:$0xff]  ;;  %v512_v9 = vld [vmem:[%s847_s2 + $0x38] sm:$0xff]  ;;  %v511_v12 = vld [vmem:[%s847_s2 + $0x30] sm:$0xff] }
   0x9   :  { %v524_v10 = vld [vmem:[%s847_s2 + $0x58] sm:$0xff]  ;;  %135 = vmatpush.msra.mxu1 %v512_v9  ;;  %v523_v13 = vld [vmem:[%s847_s2 + $0x50] sm:$0xff]  ;;  %v510_v15 = vld [vmem:[%s847_s2 + $0x28] sm:$0xff]  ;;  %vm100_vm2 = vcmp.lt.s32.totalorder %v696_v27, 7  ;;  %vm197_vm3 = vcmp.lt.s32.totalorder %v696_v27, 6  ;;  %vm256_vm4 = vcmp.lt.s32.totalorder %v696_v27, 5 }
   0xa   :  { %178 = vmatpush.msra.mxu2 %v91_v7  ;;  %v532_v11 = vld [vmem:[%s847_s2 + $0x78] sm:$0xff]  ;;  %231 = vmatpush.msra.mxu3 %v524_v10  ;;  %v531_v14 = vld [vmem:[%s847_s2 + $0x70] sm:$0xff]  ;;  %v522_v16 = vld [vmem:[%s847_s2 + $0x48] sm:$0xff]  ;;  %vm315_vm5 = vcmp.lt.s32.totalorder %v696_v27, 4 }
   0xb   :  { %290 = vmatpush.msrb.mxu0 %v532_v11  ;;  %136 = vmatpush.msra.mxu1 %v511_v12  ;;  %v530_v17 = vld [vmem:[%s847_s2 + $0x68] sm:$0xff]  ;;  %v509_v18 = vld [vmem:[%s847_s2 + $0x20] sm:$0xff]  ;;  %v540_v21 = vld [vmem:[%s847_s2 + $0x98] sm:$0xff] }
   0xc   :  { %179 = vmatpush.msra.mxu2 %v90_v8  ;;  %232 = vmatpush.msra.mxu3 %v523_v13  ;;  %v521_v19 = vld [vmem:[%s847_s2 + $0x40] sm:$0xff]  ;;  %v539_v22 = vld [vmem:[%s847_s2 + $0x90] sm:$0xff]  ;;  %v538_v23 = vld [vmem:[%s847_s2 + $0x88] sm:$0xff] }
   0xd   :  { %291 = vmatpush.msrb.mxu0 %v531_v14  ;;  %137 = vmatpush.msra.mxu1 %v510_v15  ;;  %v529_v20 = vld [vmem:[%s847_s2 + $0x60] sm:$0xff]  ;;  %v411_v3 = vld [vmem:[#allocation2 + $0x78] sm:$0xff]  ;;  %v406_v8 = vld [vmem:[#allocation2 + $0x50] sm:$0xff] }
   0xe   :  { %233 = vmatpush.msra.mxu3 %v522_v16  ;;  %v537_v28 = vld [vmem:[%s847_s2 + $0x80] sm:$0xff]  ;;  %414 = vmatpush.msrb.mxu2 %v411_v3  ;;  %v407_v7 = vld [vmem:[#allocation2 + $0x58] sm:$0xff]  ;;  %v405_v9 = vld [vmem:[#allocation2 + $0x48] sm:$0xff] }
   0xf   :  { %506 = vmatmul.msk.f32.gmra.mxu0 %vm44_vm0, %v40_v4  ;;  %138 = vmatpush.msra.mxu1 %v509_v18  ;;  %v410_v4 = vld [vmem:[#allocation2 + $0x70] sm:$0xff]  ;;  %v404_v10 = vld [vmem:[#allocation2 + $0x40] sm:$0xff]  ;;  %v403_v11 = vld [vmem:[#allocation2 + $0x38] sm:$0xff] }
  0x10   :  { %292 = vmatpush.msrb.mxu0 %v530_v17  ;;  %234 = vmatpush.msra.mxu3 %v521_v19  ;;  %v402_v12 = vld [vmem:[#allocation2 + $0x30] sm:$0xff]  ;;  %v401_v14 = vld [vmem:[#allocation2 + $0x28] sm:$0xff]  ;;  %v400_v15 = vld [vmem:[#allocation2 + $0x20] sm:$0xff] }
  0x11   :  { %349 = vmatpush.msrb.mxu1 %v540_v21  ;;  %415 = vmatpush.msrb.mxu2 %v410_v4  ;;  %v399_v16 = vld [vmem:[#allocation2 + $0x18] sm:$0xff]  ;;  %v398_v17 = vld [vmem:[#allocation2 + $0x10] sm:$0xff]  ;;  %v397_v19 = vld [vmem:[#allocation2 + $0x8] sm:$0xff] }
  0x12   :  { %293 = vmatpush.msrb.mxu0 %v529_v20  ;;  %v396_v20 = vld [vmem:[#allocation2] sm:$0xff] }
  0x13   :  { %350 = vmatpush.msrb.mxu1 %v539_v22 }
  0x15   :  { %351 = vmatpush.msrb.mxu1 %v538_v23 }
  0x17   :  { %507 = vmatmul.msk.f32.gmra.mxu0 %vm44_vm0, %v41_v5  ;;  %352 = vmatpush.msrb.mxu1 %v537_v28  ;;  %v409_v5 = vld [vmem:[#allocation2 + $0x68] sm:$0xff] }
  0x18   :  { %416 = vmatpush.msrb.mxu2 %v409_v5  ;;  %v455_v5 = vld [vmem:[%s849_s4 + $0x40] sm:$0xff] }
  0x1f   :  { %508 = vmatmul.msk.f32.gmra.mxu0 %vm44_vm0, %v42_v6  ;;  %v408_v6 = vld [vmem:[#allocation2 + $0x60] sm:$0xff] }
  0x20   :  { %417 = vmatpush.msrb.mxu2 %v408_v6 }
  0x22   :  { %418 = vmatpush.msrb.mxu2 %v407_v7 }
  0x24   :  { %419 = vmatpush.msrb.mxu2 %v406_v8 }
  0x26   :  { %420 = vmatpush.msrb.mxu2 %v405_v9  ;;  %v454_v9 = vld [vmem:[%s849_s4 + $0x38] sm:$0xff] }
  0x28   :  { %421 = vmatpush.msrb.mxu2 %v404_v10 }
  0x2a   :  { %422 = vmatpush.msrb.mxu2 %v403_v11  ;;  %v453_v11 = vld [vmem:[%s849_s4 + $0x30] sm:$0xff] }
  0x2c   :  { %423 = vmatpush.msrb.mxu2 %v402_v12 }
  0x2e   :  { %424 = vmatpush.msrb.mxu2 %v401_v14 }
  0x30   :  { %425 = vmatpush.msrb.mxu2 %v400_v15  ;;  %v452_v15 = vld [vmem:[%s849_s4 + $0x28] sm:$0xff] }
  0x32   :  { %426 = vmatpush.msrb.mxu2 %v399_v16 }
  0x34   :  { %427 = vmatpush.msrb.mxu2 %v398_v17 }
  0x36   :  { %428 = vmatpush.msrb.mxu2 %v397_v19  ;;  %v451_v19 = vld [vmem:[%s849_s4 + $0x20] sm:$0xff] }
  0x38   :  { %429 = vmatpush.msrb.mxu2 %v396_v20 }
  0x84   :  { %v74_v24 = vpop.f32.mrf.mxu0 }
  0x85   :  { %v692_v25 = vmax.f32 %v74_v24, 0.0 }
  0x87   :  { %517 = vmatmul.msk.f32.vlgmr.msra.gmra.mxu2 %vm110_vm1, %v692_v25  ;;  %v94_v31 = vrot.slane %v692_v25, 1  ;;  %v193_v32 = vrot.slane %v692_v25, 2  ;;  %v252_v35 = vrot.slane %v692_v25, 3  ;;  %v311_v60 = vrot.slane %v692_v25, 4 }
  0x8c   :  { %v77_v29 = vpop.f32.mrf.mxu0 }
  0x8d   :  { %v87_v30 = vmax.f32 %v77_v29, 0.0 }
  0x8f   :  { %518 = vmatmul.msk.f32.gmra.mxu2 %vm110_vm1, %v87_v30  ;;  %v95_v33 = vrot.slane %v87_v30, 1  ;;  %v194_v34 = vrot.slane %v87_v30, 2  ;;  %v253_v36 = vrot.slane %v87_v30, 3  ;;  %v312_v59 = vrot.slane %v87_v30, 4 }
  0x91   :  { %v103_v37 = vsel %vm100_vm2, %v94_v31, %v95_v33  ;;  %v200_v38 = vsel %vm197_vm3, %v193_v32, %v194_v34  ;;  %v259_v39 = vsel %vm256_vm4, %v252_v35, %v253_v36  ;;  %v318_v61 = vsel %vm315_vm5, %v311_v60, %v312_v59 }
  0x92   :  { %513 = vmatmul.msk.f32.vlgmr.msra.gmra.mxu1 %vm110_vm1, %v103_v37  ;;  %525 = vmatmul.msk.f32.vlgmr.msra.gmra.mxu3 %vm110_vm1, %v200_v38  ;;  %v761_v38 = vld [vmem:[%s850_s5 + $0x1] ss:$0 sm:$0xff] }
  0x93   :  { %533 = vmatmul.msk.f32.vlgmr.msrb.gmra.mxu0 %vm110_vm1, %v259_v39 }
  0x94   :  { %v80_v40 = vpop.f32.mrf.mxu0 }
  0x95   :  { %v88_v41 = vmax.f32 %v80_v40, 0.0 }
  0x97   :  { %519 = vmatmul.msk.f32.gmra.mxu2 %vm110_vm1, %v88_v41  ;;  %v96_v42 = vrot.slane %v88_v41, 1  ;;  %v195_v43 = vrot.slane %v88_v41, 2  ;;  %v254_v44 = vrot.slane %v88_v41, 3  ;;  %v313_v62 = vrot.slane %v88_v41, 4  ;;  %v766_v41 = vld [vmem:[%s850_s5 + $0x2] ss:$0 sm:$0xff] }
  0x99   :  { %v102_v45 = vsel %vm100_vm2, %v95_v33, %v96_v42  ;;  %v199_v46 = vsel %vm197_vm3, %v194_v34, %v195_v43  ;;  %v258_v47 = vsel %vm256_vm4, %v253_v36, %v254_v44  ;;  %v317_v63 = vsel %vm315_vm5, %v312_v59, %v313_v62  ;;  %v457_v59 = vld [vmem:[%s849_s4 + $0x50] sm:$0xff] }
  0x9a   :  { %514 = vmatmul.msk.f32.gmra.mxu1 %vm110_vm1, %v102_v45  ;;  %526 = vmatmul.msk.f32.gmra.mxu3 %vm110_vm1, %v199_v46 }
  0x9b   :  { %534 = vmatmul.msk.f32.gmra.mxu0 %vm110_vm1, %v258_v47  ;;  %v460_v47 = vld [vmem:[%s849_s4 + $0x68] sm:$0xff] }
  0x9c   :  { %v83_v48 = vpop.f32.mrf.mxu0 }
  0x9d   :  { %v89_v49 = vmax.f32 %v83_v48, 0.0 }
  0x9f   :  { %520 = vmatmul.msk.f32.gmra.mxu2 %vm110_vm1, %v89_v49  ;;  %v97_v50 = vrot.slane %v89_v49, 1  ;;  %v196_v51 = vrot.slane %v89_v49, 2  ;;  %v255_v52 = vrot.slane %v89_v49, 3  ;;  %v314_v0 = vrot.slane %v89_v49, 4 }
  0xa1   :  { %v101_v53 = vsel %vm100_vm2, %v96_v42, %v97_v50  ;;  %v198_v54 = vsel %vm197_vm3, %v195_v43, %v196_v51  ;;  %v257_v55 = vsel %vm256_vm4, %v254_v44, %v255_v52  ;;  %v104_v56 = vsel %vm100_vm2, %v97_v50, %v94_v31  ;;  %v755_v31 = vld [vmem:[%s850_s5] ss:$0 sm:$0xff]  ;;  %v462_v42 = vld [vmem:[%s849_s4 + $0x78] sm:$0xff]  ;;  %v461_v43 = vld [vmem:[%s849_s4 + $0x70] sm:$0xff] }
  0xa2   :  { %515 = vmatmul.msk.f32.gmra.mxu1 %vm110_vm1, %v101_v53  ;;  %527 = vmatmul.msk.f32.gmra.mxu3 %vm110_vm1, %v198_v54  ;;  %v201_v57 = vsel %vm197_vm3, %v196_v51, %v193_v32  ;;  %v260_v58 = vsel %vm256_vm4, %v255_v52, %v252_v35  ;;  %v316_v1 = vsel %vm315_vm5, %v313_v62, %v314_v0  ;;  %v459_v52 = vld [vmem:[%s849_s4 + $0x60] sm:$0xff] }
  0xa3   :  { %535 = vmatmul.msk.f32.gmra.mxu0 %vm110_vm1, %v257_v55  ;;  %v319_v2 = vsel %vm315_vm5, %v314_v0, %v311_v60  ;;  %465 = vmatpush.msrb.mxu3 %v462_v42 }
  0xa5   :  { %466 = vmatpush.msrb.mxu3 %v461_v43  ;;  %v552_v43 = vld [vmem:[%s850_s5 + $0x4] ss:$0 sm:$0xff] }
  0xa7   :  { %467 = vmatpush.msrb.mxu3 %v460_v47 }
  0xa9   :  { %468 = vmatpush.msrb.mxu3 %v459_v52 }
  0xaa   :  { %516 = vmatmul.msk.f32.gmra.mxu1 %vm110_vm1, %v104_v56  ;;  %528 = vmatmul.msk.f32.gmra.mxu3 %vm110_vm1, %v201_v57  ;;  %v458_v56 = vld [vmem:[%s849_s4 + $0x58] sm:$0xff] }
  0xab   :  { %536 = vmatmul.msk.f32.gmra.mxu0 %vm110_vm1, %v260_v58  ;;  %469 = vmatpush.msrb.mxu3 %v458_v56 }
  0xad   :  { %470 = vmatpush.msrb.mxu3 %v457_v59 }
  0xb2   :  { %541 = vmatmul.msk.f32.vlgmr.msrb.gmra.mxu1 %vm110_vm1, %v318_v61 }
  0xba   :  { %542 = vmatmul.msk.f32.gmra.mxu1 %vm110_vm1, %v317_v63  ;;  %v456_v63 = vld [vmem:[%s849_s4 + $0x48] sm:$0xff] }
  0xbb   :  { %471 = vmatpush.msrb.mxu3 %v456_v63 }
  0xbd   :  { %472 = vmatpush.msrb.mxu3 %v455_v5 }
  0xbf   :  { %473 = vmatpush.msrb.mxu3 %v454_v9 }
  0xc1   :  { %474 = vmatpush.msrb.mxu3 %v453_v11 }
  0xc2   :  { %543 = vmatmul.msk.f32.gmra.mxu1 %vm110_vm1, %v316_v1 }
  0xc3   :  { %475 = vmatpush.msrb.mxu3 %v452_v15 }
  0xc5   :  { %476 = vmatpush.msrb.mxu3 %v451_v19 }
  0xca   :  { %544 = vmatmul.msk.f32.gmra.mxu1 %vm110_vm1, %v319_v2 }
 0x10a   :  { %v181_v22 = vpop.f32.mrf.mxu2 }
 0x10f   :  { %v140_v13 = vpop.f32.mrf.mxu1 }
 0x110   :  { %v295_v24 = vpop.f32.mrf.mxu0  ;;  %v182_v26 = vadd.f32 %v181_v22, %v140_v13  ;;  %v450_v22 = vld [vmem:[%s849_s4 + $0x18] sm:$0xff] }
 0x111   :  { %477 = vmatpush.msrb.mxu3 %v450_v22 }
 0x112   :  { %v184_v27 = vpop.f32.mrf.mxu2 }
 0x115   :  { %v236_v23 = vpop.f32.mrf.mxu3 }
 0x116   :  { %v248_v28 = vadd.f32 %v236_v23, %v182_v26 }
 0x117   :  { %v143_v18 = vpop.f32.mrf.mxu1 }
 0x118   :  { %v307_v30 = vadd.f32 %v295_v24, %v248_v28  ;;  %v185_v33 = vadd.f32 %v184_v27, %v143_v18  ;;  %v298_v35 = vpop.f32.mrf.mxu0  ;;  %v449_v24 = vld [vmem:[%s849_s4 + $0x10] sm:$0xff]  ;;  %v448_v28 = vld [vmem:[%s849_s4 + $0x8] sm:$0xff] }
 0x119   :  { %478 = vmatpush.msrb.mxu3 %v449_v24 }
 0x11a   :  { %v187_v39 = vpop.f32.mrf.mxu2 }
 0x11b   :  { %479 = vmatpush.msrb.mxu3 %v448_v28 }
 0x11d   :  { %v239_v29 = vpop.f32.mrf.mxu3 }
 0x11e   :  { %v249_v36 = vadd.f32 %v239_v29, %v185_v33  ;;  %v447_v29 = vld [vmem:[%s849_s4] sm:$0xff] }
 0x11f   :  { %v146_v21 = vpop.f32.mrf.mxu1  ;;  %480 = vmatpush.msrb.mxu3 %v447_v29 }
 0x120   :  { %v308_v46 = vadd.f32 %v298_v35, %v249_v36  ;;  %v188_v49 = vadd.f32 %v187_v39, %v146_v21  ;;  %v301_v57 = vpop.f32.mrf.mxu0 }
 0x122   :  { %v190_v60 = vpop.f32.mrf.mxu2 }
 0x125   :  { %v242_v44 = vpop.f32.mrf.mxu3 }
 0x126   :  { %v250_v53 = vadd.f32 %v242_v44, %v188_v49 }
 0x127   :  { %v149_v25 = vpop.f32.mrf.mxu1 }
 0x128   :  { %v309_v61 = vadd.f32 %v301_v57, %v250_v53  ;;  %v191_v2 = vadd.f32 %v190_v60, %v149_v25  ;;  %v304_v12 = vpop.f32.mrf.mxu0 }
 0x12d   :  { %v245_v0 = vpop.f32.mrf.mxu3 }
 0x12e   :  { %v251_v6 = vadd.f32 %v245_v0, %v191_v2 }
 0x12f   :  { %v354_v32 = vpop.f32.mrf.mxu1 }
 0x130   :  { %v366_v34 = vadd.f32 %v354_v32, %v307_v30  ;;  %v310_v13 = vadd.f32 %v304_v12, %v251_v6  ;;  %v551_v30 = vld [vmem:[%s850_s5 + $0x3] ss:$0 sm:$0xff] }
 0x132   :  { %v372_v37 = vadd.f32 %v755_v31, %v366_v34 }
 0x134   :  { %v376_v40 = vmax.f32 %v372_v37, 0.0 }
 0x136   :  { %v382_v45 = vmul.f32 %v761_v38, %v376_v40 }
 0x137   :  { %v357_v48 = vpop.f32.mrf.mxu1 }
 0x138   :  { %v367_v50 = vadd.f32 %v357_v48, %v308_v46  ;;  %v388_v51 = vadd.f32 %v766_v41, %v382_v45 }
 0x13a   :  { %v373_v54 = vadd.f32 %v755_v31, %v367_v50  ;;  %v392_v55 = vmax.f32 %v388_v51, 0.0 }
 0x13c   :  { %v377_v58 = vmax.f32 %v373_v54, 0.0  ;;  %430 = vmatmul.f32.vlgmr.msrb.gmra.mxu2 %v392_v55 }
 0x13e   :  { %v383_v62 = vmul.f32 %v761_v38, %v377_v58 }
 0x13f   :  { %v360_v1 = vpop.f32.mrf.mxu1 }
 0x140   :  { %v368_v3 = vadd.f32 %v360_v1, %v309_v61  ;;  %v389_v4 = vadd.f32 %v766_v41, %v383_v62 }
 0x142   :  { %v374_v7 = vadd.f32 %v755_v31, %v368_v3  ;;  %v393_v8 = vmax.f32 %v389_v4, 0.0 }
 0x144   :  { %v378_v10 = vmax.f32 %v374_v7, 0.0  ;;  %433 = vmatmul.f32.gmra.mxu2 %v393_v8 }
 0x146   :  { %v384_v14 = vmul.f32 %v761_v38, %v378_v10 }
 0x147   :  { %v363_v16 = vpop.f32.mrf.mxu1 }
 0x148   :  { %v369_v17 = vadd.f32 %v363_v16, %v310_v13  ;;  %v390_v18 = vadd.f32 %v766_v41, %v384_v14 }
 0x14a   :  { %v375_v20 = vadd.f32 %v755_v31, %v369_v17  ;;  %v394_v21 = vmax.f32 %v390_v18, 0.0 }
 0x14c   :  { %v379_v23 = vmax.f32 %v375_v20, 0.0  ;;  %436 = vmatmul.f32.gmra.mxu2 %v394_v21 }
 0x14e   :  { %v385_v25 = vmul.f32 %v761_v38, %v379_v23 }
 0x150   :  { %v391_v26 = vadd.f32 %v766_v41, %v385_v25 }
 0x152   :  { %v395_v27 = vmax.f32 %v391_v26, 0.0 }
 0x154   :  { %439 = vmatmul.f32.gmra.mxu2 %v395_v27 }
 0x1bf   :  { %v431_v31 = vpop.f32.mrf.mxu2 }
 0x1c0   :  { %v432_v32 = vadd.f32 %v551_v30, %v431_v31 }
 0x1c2   :  { %v443_v33 = vmax.f32 %v432_v32, 0.0 }
 0x1c4   :  { %481 = vmatmul.f32.vlgmr.msrb.gmra.mxu3 %v443_v33 }
 0x1c7   :  { %v434_v34 = vpop.f32.mrf.mxu2 }
 0x1c8   :  { %v435_v35 = vadd.f32 %v551_v30, %v434_v34 }
 0x1ca   :  { %v444_v36 = vmax.f32 %v435_v35, 0.0 }
 0x1cc   :  { %484 = vmatmul.f32.gmra.mxu3 %v444_v36 }
 0x1cf   :  { %v437_v37 = vpop.f32.mrf.mxu2 }
 0x1d0   :  { %v438_v38 = vadd.f32 %v551_v30, %v437_v37 }
 0x1d2   :  { %v445_v39 = vmax.f32 %v438_v38, 0.0 }
 0x1d4   :  { %487 = vmatmul.f32.gmra.mxu3 %v445_v39 }
 0x1d7   :  { %v440_v40 = vpop.f32.mrf.mxu2 }
 0x1d8   :  { %v441_v41 = vadd.f32 %v551_v30, %v440_v40 }
 0x1da   :  { %v446_v42 = vmax.f32 %v441_v41, 0.0 }
 0x1dc   :  { %490 = vmatmul.f32.gmra.mxu3 %v446_v42 }
 0x247   :  { %v482_v44 = vpop.f32.mrf.mxu3 }
 0x248   :  { %v483_v45 = vadd.f32 %v552_v43, %v482_v44 }
 0x24a   :  { %495 = vst.msk [vmem:[%s851_s6] sm:$0xff] %vm494_vm6, %v483_v45 }
 0x24f   :  { %v485_v46 = vpop.f32.mrf.mxu3 }
 0x250   :  { %v486_v47 = vadd.f32 %v552_v43, %v485_v46 }
 0x252   :  { %497 = vst.msk [vmem:[%s851_s6 + $0x8] sm:$0xf] %vm496_vm7, %v486_v47 }
 0x257   :  { %v488_v48 = vpop.f32.mrf.mxu3 }
 0x258   :  { %v489_v49 = vadd.f32 %v552_v43, %v488_v48 }
 0x25a   :  { %498 = vst.msk [vmem:[%s851_s6 + $0x10] sm:$0xff] %vm494_vm6, %v489_v49 }
 0x25f   :  { %v491_v50 = vpop.f32.mrf.mxu3 }
 0x260   :  { %v492_v51 = vadd.f32 %v552_v43, %v491_v50 }
 0x262   :  { %499 = vst.msk [vmem:[%s851_s6 + $0x18] sm:$0xf] %vm496_vm7, %v492_v51 }
 0x263   :  { %504 = vsyncpa [#allocation3], 1 }

</bundles_post_ra>
